<compile_context>
chip_gen: v5e
topology: v5e:2x2
jax: 0.10.0
libtpu: 0.0.40
codegen_flags: <defaults>
</compile_context>

<pallas_src>
import jax
import jax.numpy as jnp
import numpy as np
from jax.experimental import pallas as pl
from jax.experimental.pallas import tpu as pltpu


def _actor_fc_kernel(
    x_ref,                       # (in_dim, bm)   batch in lanes
    w1_ref, b1_ref,              # (fc1, in), (fc1, 1)
    w2_ref, b2_ref,              # (fc2, fc1), (fc2, 1)
    uw_ref, ub_ref,              # (A, fc2), (A, 1)
    abds_ref,                    # (A, 1)
    out_ref,                     # (A, bm)
):
    """ActorFc forward for one batch block (feature-major layout)."""
    xT = x_ref[...]

    # fc1 (+ folded frozen input scaling) + relu            -> (fc1, bm)
    h1 = jnp.dot(w1_ref[...], xT, preferred_element_type=jnp.float32) + b1_ref[...]
    h1 = jnp.maximum(h1, 0.0)

    # fc2 + relu                                            -> (fc2, bm)
    h2 = jnp.dot(w2_ref[...], h1, preferred_element_type=jnp.float32) + b2_ref[...]
    h2 = jnp.maximum(h2, 0.0)

    # u + tanh                                              -> (A, bm)
    a = jnp.dot(uw_ref[...], h2, preferred_element_type=jnp.float32) + ub_ref[...]
    a = jnp.tanh(a)

    # sl: frozen diag(action_bds), zero bias -> broadcast multiply (VPU)
    out_ref[...] = (a * abds_ref[...]).astype(out_ref.dtype)


def prepare_params(params):
    """One-time transform from PyTorch-convention params to kernel layout.

    nl / sl are frozen diagonal layers with zero bias, so folding nl into W1
    and replacing sl by an elementwise scale is exactly the module's forward.
    Weights keep the (out_f, in_f) orientation for the transposed kernel.
    """
    inv_bds = jnp.diagonal(params["nl_w"])                 # 1 / input_bds
    act_bds = jnp.diagonal(params["sl_w"])                 # action_bds

    w1 = params["fc1_w"] * inv_bds[None, :]                # (fc1, in), nl folded
    b1 = params["fc1_b"].reshape(-1, 1)                    # (fc1, 1)
    w2 = params["fc2_w"]                                   # (fc2, fc1)
    b2 = params["fc2_b"].reshape(-1, 1)
    uw = params["u_w"]                                     # (A, fc2)
    ub = params["u_b"].reshape(-1, 1)
    abds = act_bds.reshape(-1, 1).astype(jnp.float32)      # (A, 1)

    return dict(w1=w1, b1=b1, w2=w2, b2=b2, uw=uw, ub=ub, abds=abds)


def _round_up(x, m):
    return ((x + m - 1) // m) * m


def _pick_bm(B, block_m):
    """Pick the batch tile (lane width) and grid size."""
    block_m = _round_up(max(block_m, 128), 128)
    if B <= 512:
        # Single full-extent block: block dims equal array dims, any B is legal.
        return B, 1
    # Keep grid_b >= 2 so v7x's two TensorCores both get work; bm is a
    # multiple of 512 (hence 128) so the block-shape rule holds, and the last
    # block may be partial (Pallas write-masks it).
    bm = min(block_m, _round_up(-(-B // 2), 512))
    return bm, -(-B // bm)


def actor_fc_pallas(state, kp, *, block_m=2048):
    """Pallas path.  state: (B, input_size) f32.  kp: prepare_params() output."""
    B, in_dim = state.shape
    A = kp["abds"].shape[0]
    bm, grid_b = _pick_bm(B, block_m)

    xT = state.T                                           # (in_dim, B), tiny copy

    resident = lambda arr: pl.BlockSpec(arr.shape, lambda i: (0, 0))

    outT = pl.pallas_call(
        _actor_fc_kernel,
        out_shape=jax.ShapeDtypeStruct((A, B), jnp.float32),
        grid=(grid_b,),
        in_specs=[
            pl.BlockSpec((in_dim, bm), lambda i: (0, i)),
            resident(kp["w1"]), resident(kp["b1"]),
            resident(kp["w2"]), resident(kp["b2"]),
            resident(kp["uw"]), resident(kp["ub"]),
            resident(kp["abds"]),
        ],
        out_specs=pl.BlockSpec((A, bm), lambda i: (0, i)),
        compiler_params=pltpu.CompilerParams(
            dimension_semantics=("parallel",)),
        # VMEM at these shapes is tiny (< a few MiB even at bm=4096), well
        # under the v5e 16 MiB default scoped limit; no override needed.
    )(xT, kp["w1"], kp["b1"], kp["w2"], kp["b2"], kp["uw"], kp["ub"], kp["abds"])

    return outT.T                                          # (B, A), tiny copy


def actor_fc_xla(state, kp):
    """Plain fused-XLA path for tiny batches (launch overhead dominates)."""
    h1 = jax.nn.relu(jnp.dot(state, kp["w1"].T) + kp["b1"].T)
    h2 = jax.nn.relu(jnp.dot(h1, kp["w2"].T) + kp["b2"].T)
    a = jnp.tanh(jnp.dot(h2, kp["uw"].T) + kp["ub"].T)
    return a * kp["abds"].T


def actor_fc_forward(state, kp, *, block_m=2048, pallas_min_batch=64):
    """Dispatch: tiny batches go to fused XLA, larger batches to the kernel."""
    if state.shape[0] < pallas_min_batch:
        return actor_fc_xla(state, kp)
    return actor_fc_pallas(state, kp, block_m=block_m)


actor_fc_apply = jax.jit(actor_fc_forward,
                         static_argnames=("block_m", "pallas_min_batch"))
actor_fc_pallas_jit = jax.jit(actor_fc_pallas, static_argnames=("block_m",))


def init_params(key, input_size, fc1_dims, fc2_dims, action_size,
                input_bds, action_bds):
    """Deterministic synthetic init mirroring the PyTorch __init__."""
    keys = jax.random.split(key, 6)

    def torch_linear_init(kw, kb, out_f, in_f):
        bound = 1.0 / np.sqrt(in_f)
        w = jax.random.uniform(kw, (out_f, in_f), jnp.float32, -bound, bound)
        b = jax.random.uniform(kb, (out_f,), jnp.float32, -bound, bound)
        return w, b

    # nl: frozen diag(1 / input_bds), zero bias
    nl_w = jnp.diag(1.0 / jnp.asarray(input_bds, jnp.float32))
    nl_b = jnp.zeros((input_size,), jnp.float32)

    fc1_w, fc1_b = torch_linear_init(keys[0], keys[1], fc1_dims, input_size)
    fc2_w, fc2_b = torch_linear_init(keys[2], keys[3], fc2_dims, fc1_dims)

    # u: uniform(-0.01, 0.01)
    f3 = 0.01
    u_w = jax.random.uniform(keys[4], (action_size, fc2_dims), jnp.float32, -f3, f3)
    u_b = jax.random.uniform(keys[5], (action_size,), jnp.float32, -f3, f3)

    # sl: frozen diag(action_bds), zero bias
    sl_w = jnp.diag(jnp.asarray(action_bds, jnp.float32))
    sl_b = jnp.zeros((action_size,), jnp.float32)

    return dict(nl_w=nl_w, nl_b=nl_b, fc1_w=fc1_w, fc1_b=fc1_b,
                fc2_w=fc2_w, fc2_b=fc2_b, u_w=u_w, u_b=u_b,
                sl_w=sl_w, sl_b=sl_b)


def reference_forward(state, p):
    """Pure-JAX reference of the PyTorch forward for a sanity check."""
    s = state @ p["nl_w"].T + p["nl_b"]
    h1 = jax.nn.relu(s @ p["fc1_w"].T + p["fc1_b"])
    h2 = jax.nn.relu(h1 @ p["fc2_w"].T + p["fc2_b"])
    a = jnp.tanh(h2 @ p["u_w"].T + p["u_b"])
    return a @ p["sl_w"].T + p["sl_b"]


if __name__ == "__main__":
    # Small shapes consistent with the module's constructor.
    batch = 2
    input_size = 8
    fc1_dims = 32
    fc2_dims = 32
    action_size = 4
    input_bds = [1.0, 2.0, 0.5, 4.0, 1.0, 2.0, 0.5, 4.0]
    action_bds = [1.5, 0.5, 2.0, 1.0]

    key = jax.random.PRNGKey(0)
    k_params, k_state = jax.random.split(key)

    params = init_params(k_params, input_size, fc1_dims, fc2_dims,
                         action_size, input_bds, action_bds)
    kparams = prepare_params(params)            # one-time kernel-layout prep
    state = jax.random.normal(k_state, (batch, input_size), jnp.float32)

    # 1) Exercise the Pallas kernel directly at the small shape (B=2).
    out = jax.block_until_ready(actor_fc_pallas_jit(state, kparams))
    ref = reference_forward(state, params)
    np.testing.assert_allclose(np.asarray(out), np.asarray(ref),
                               rtol=1e-5, atol=1e-5)

    # 2) Dispatcher at tiny batch -> fused XLA fast path (same semantics).
    out_small = jax.block_until_ready(actor_fc_apply(state, kparams))
    np.testing.assert_allclose(np.asarray(out_small), np.asarray(ref),
                               rtol=1e-5, atol=1e-5)

    # 3) Large batch: tiled Pallas path with grid_b >= 2 and a partial last
    #    block (no wrapper pad / slice -- Pallas write-masks the tail).
    big_state = jax.random.normal(jax.random.PRNGKey(1), (600, input_size),
                                  jnp.float32)
    big_out = jax.block_until_ready(actor_fc_apply(big_state, kparams))
    big_ref = reference_forward(big_state, params)
    np.testing.assert_allclose(np.asarray(big_out), np.asarray(big_ref),
                               rtol=1e-5, atol=1e-5)

    print("KERNEL_OK")
</pallas_src>

<mosaic_0001>
module attributes {stable_mosaic.version = 11 : i64} {
  func.func @_actor_fc_kernel(%arg0: i32, %arg1: memref<8x2xf32, #tpu.memory_space<vmem>>, %arg2: memref<32x8xf32, #tpu.memory_space<vmem>>, %arg3: memref<32x1xf32, #tpu.memory_space<vmem>>, %arg4: memref<32x32xf32, #tpu.memory_space<vmem>>, %arg5: memref<32x1xf32, #tpu.memory_space<vmem>>, %arg6: memref<4x32xf32, #tpu.memory_space<vmem>>, %arg7: memref<4x1xf32, #tpu.memory_space<vmem>>, %arg8: memref<4x1xf32, #tpu.memory_space<vmem>>, %arg9: memref<4x2xf32, #tpu.memory_space<vmem>>) attributes {dimension_semantics = [#tpu.dimension_semantics<parallel>], iteration_bounds = array<i64: 1>, scalar_prefetch = 0 : i64, scratch_operands = 0 : i64, tpu.core_type = #tpu.core_type<tc>, window_params = [{transform_indices = @transform_0, window_bounds = array<i64: 8, 2>}, {pipeline_mode = #tpu.pipeline_mode<synchronous>, transform_indices = @transform_1, window_bounds = array<i64: 32, 8>}, {pipeline_mode = #tpu.pipeline_mode<synchronous>, transform_indices = @transform_2, window_bounds = array<i64: 32, 1>}, {pipeline_mode = #tpu.pipeline_mode<synchronous>, transform_indices = @transform_3, window_bounds = array<i64: 32, 32>}, {pipeline_mode = #tpu.pipeline_mode<synchronous>, transform_indices = @transform_4, window_bounds = array<i64: 32, 1>}, {pipeline_mode = #tpu.pipeline_mode<synchronous>, transform_indices = @transform_5, window_bounds = array<i64: 4, 32>}, {pipeline_mode = #tpu.pipeline_mode<synchronous>, transform_indices = @transform_6, window_bounds = array<i64: 4, 1>}, {pipeline_mode = #tpu.pipeline_mode<synchronous>, transform_indices = @transform_7, window_bounds = array<i64: 4, 1>}, {transform_indices = @transform_8, window_bounds = array<i64: 4, 2>}]} {
    %c0 = arith.constant 0 : index
    %c0_0 = arith.constant 0 : index
    %0 = vector.load %arg1[%c0, %c0_0] : memref<8x2xf32, #tpu.memory_space<vmem>>, vector<8x2xf32>
    %c0_1 = arith.constant 0 : index
    %c0_2 = arith.constant 0 : index
    %1 = vector.load %arg2[%c0_1, %c0_2] : memref<32x8xf32, #tpu.memory_space<vmem>>, vector<32x8xf32>
    %cst = arith.constant dense<0.000000e+00> : vector<32x2xf32>
    %2 = tpu.matmul %1, %0, %cst {dimension_numbers = #tpu.dot_dimension_numbers<[1], [0], [0], [1], [0, 0, 1, 1], [], []>} : vector<32x8xf32>, vector<8x2xf32>, vector<32x2xf32> -> vector<32x2xf32>
    %c0_3 = arith.constant 0 : index
    %c0_4 = arith.constant 0 : index
    %3 = vector.load %arg3[%c0_3, %c0_4] : memref<32x1xf32, #tpu.memory_space<vmem>>, vector<32x1xf32>
    %4 = vector.broadcast %3 : vector<32x1xf32> to vector<32x2xf32>
    %5 = arith.addf %2, %4 : vector<32x2xf32>
    %cst_5 = arith.constant 0.000000e+00 : f32
    %6 = vector.broadcast %cst_5 : f32 to vector<32x2xf32>
    %7 = arith.maximumf %5, %6 : vector<32x2xf32>
    %c0_6 = arith.constant 0 : index
    %c0_7 = arith.constant 0 : index
    %8 = vector.load %arg4[%c0_6, %c0_7] : memref<32x32xf32, #tpu.memory_space<vmem>>, vector<32x32xf32>
    %cst_8 = arith.constant dense<0.000000e+00> : vector<32x2xf32>
    %9 = tpu.matmul %8, %7, %cst_8 {dimension_numbers = #tpu.dot_dimension_numbers<[1], [0], [0], [1], [0, 0, 1, 1], [], []>} : vector<32x32xf32>, vector<32x2xf32>, vector<32x2xf32> -> vector<32x2xf32>
    %c0_9 = arith.constant 0 : index
    %c0_10 = arith.constant 0 : index
    %10 = vector.load %arg5[%c0_9, %c0_10] : memref<32x1xf32, #tpu.memory_space<vmem>>, vector<32x1xf32>
    %11 = vector.broadcast %10 : vector<32x1xf32> to vector<32x2xf32>
    %12 = arith.addf %9, %11 : vector<32x2xf32>
    %cst_11 = arith.constant 0.000000e+00 : f32
    %13 = vector.broadcast %cst_11 : f32 to vector<32x2xf32>
    %14 = arith.maximumf %12, %13 : vector<32x2xf32>
    %c0_12 = arith.constant 0 : index
    %c0_13 = arith.constant 0 : index
    %15 = vector.load %arg6[%c0_12, %c0_13] : memref<4x32xf32, #tpu.memory_space<vmem>>, vector<4x32xf32>
    %cst_14 = arith.constant dense<0.000000e+00> : vector<4x2xf32>
    %16 = tpu.matmul %15, %14, %cst_14 {dimension_numbers = #tpu.dot_dimension_numbers<[1], [0], [0], [1], [0, 0, 1, 1], [], []>} : vector<4x32xf32>, vector<32x2xf32>, vector<4x2xf32> -> vector<4x2xf32>
    %c0_15 = arith.constant 0 : index
    %c0_16 = arith.constant 0 : index
    %17 = vector.load %arg7[%c0_15, %c0_16] : memref<4x1xf32, #tpu.memory_space<vmem>>, vector<4x1xf32>
    %18 = vector.broadcast %17 : vector<4x1xf32> to vector<4x2xf32>
    %19 = arith.addf %16, %18 : vector<4x2xf32>
    %20 = math.tanh %19 : vector<4x2xf32>
    %c0_17 = arith.constant 0 : index
    %c0_18 = arith.constant 0 : index
    %21 = vector.load %arg8[%c0_17, %c0_18] : memref<4x1xf32, #tpu.memory_space<vmem>>, vector<4x1xf32>
    %22 = vector.broadcast %21 : vector<4x1xf32> to vector<4x2xf32>
    %23 = arith.mulf %20, %22 : vector<4x2xf32>
    %c0_19 = arith.constant 0 : index
    %c0_20 = arith.constant 0 : index
    %24 = vector.load %arg9[%c0_19, %c0_20] : memref<4x2xf32, #tpu.memory_space<vmem>>, vector<4x2xf32>
    tpu.vector_store %arg9[%c0_19, %c0_20], %23 {strides = array<i32>} : memref<4x2xf32, #tpu.memory_space<vmem>>, vector<4x2xf32>,
    return
  }
  func.func @transform_0(%arg0: i32) -> (i32, i32) {
    %c0_i32 = arith.constant 0 : i32
    %c0_i32_0 = arith.constant 0 : i32
    return %c0_i32, %arg0 : i32, i32
  }
  func.func @transform_1(%arg0: i32) -> (i32, i32) {
    %c0_i32 = arith.constant 0 : i32
    %c0_i32_0 = arith.constant 0 : i32
    %c0_i32_1 = arith.constant 0 : i32
    return %c0_i32, %c0_i32_0 : i32, i32
  }
  func.func @transform_2(%arg0: i32) -> (i32, i32) {
    %c0_i32 = arith.constant 0 : i32
    %c0_i32_0 = arith.constant 0 : i32
    %c0_i32_1 = arith.constant 0 : i32
    return %c0_i32, %c0_i32_0 : i32, i32
  }
  func.func @transform_3(%arg0: i32) -> (i32, i32) {
    %c0_i32 = arith.constant 0 : i32
    %c0_i32_0 = arith.constant 0 : i32
    %c0_i32_1 = arith.constant 0 : i32
    return %c0_i32, %c0_i32_0 : i32, i32
  }
  func.func @transform_4(%arg0: i32) -> (i32, i32) {
    %c0_i32 = arith.constant 0 : i32
    %c0_i32_0 = arith.constant 0 : i32
    %c0_i32_1 = arith.constant 0 : i32
    return %c0_i32, %c0_i32_0 : i32, i32
  }
  func.func @transform_5(%arg0: i32) -> (i32, i32) {
    %c0_i32 = arith.constant 0 : i32
    %c0_i32_0 = arith.constant 0 : i32
    %c0_i32_1 = arith.constant 0 : i32
    return %c0_i32, %c0_i32_0 : i32, i32
  }
  func.func @transform_6(%arg0: i32) -> (i32, i32) {
    %c0_i32 = arith.constant 0 : i32
    %c0_i32_0 = arith.constant 0 : i32
    %c0_i32_1 = arith.constant 0 : i32
    return %c0_i32, %c0_i32_0 : i32, i32
  }
  func.func @transform_7(%arg0: i32) -> (i32, i32) {
    %c0_i32 = arith.constant 0 : i32
    %c0_i32_0 = arith.constant 0 : i32
    %c0_i32_1 = arith.constant 0 : i32
    return %c0_i32, %c0_i32_0 : i32, i32
  }
  func.func @transform_8(%arg0: i32) -> (i32, i32) {
    %c0_i32 = arith.constant 0 : i32
    %c0_i32_0 = arith.constant 0 : i32
    return %c0_i32, %arg0 : i32, i32
  }
}

</mosaic_0001>

<bundles_post_ra>
// kernel: actor_fc_pallas.1
= control target key start
LH: loop header
LB: loop body
LE: loop exit
PB: predicated region body
PF: predicated region fallthrough
CT: control target
= control target key end

     0   :  { %vm58_vm0 = vcmask 64512   ;;  %v242_v0 = vmov 0   ;;  %vm132_vm1 = vcmask 261120   ;;  %vm216_vm2 = vcmask 11264   ;;  %s360_s2 = inlined_call_operand.vmem [shape: f32[32,1], index: 2, kind: input, shape index: {}]   ;;  %s361_s0 = inlined_call_operand.vmem [shape: f32[8,2], index: 0, kind: input, shape index: {}]   ;;  %s362_s1 = inlined_call_operand.vmem [shape: f32[32,8], index: 1, kind: input, shape index: {}]   ;;  %s363_s4 = inlined_call_operand.vmem [shape: f32[32,1], index: 4, kind: input, shape index: {}]   ;;  %s364_s7 = inlined_call_operand.vmem [shape: f32[4,1], index: 7, kind: input, shape index: {}]   ;;  %s365_s6 = inlined_call_operand.vmem [shape: f32[4,1], index: 6, kind: input, shape index: {}]   ;;  %s366_s3 = inlined_call_operand.vmem [shape: f32[32,32], index: 3, kind: input, shape index: {}]   ;;  %s367_s5 = inlined_call_operand.vmem [shape: f32[4,32], index: 5, kind: input, shape index: {}]   ;;  %s368_s8 = inlined_call_operand.vmem [shape: f32[4,2], index: 8, kind: output, shape index: {}]  }
   0x1   :  { %237 = vset.pattern.permute.xlu0 %v242_v0  ;;  %v37_v1 = vld [vmem:[%s360_s2 + $0x18] sm:$0xff]  ;;  %v29_v2 = vld [vmem:[%s361_s0] sm:$0xff]  ;;  %238 = vset.pattern.permute.xlu1 %v242_v0  ;;  %v35_v5 = vld [vmem:[%s360_s2 + $0x8] sm:$0xff] }
   0x2   :  { %v30_v3 = vld [vmem:[%s362_s1] sm:$0xff]  ;;  %55 = vperm.xlu0 %237, %v37_v1   ;;  %86 = vmatpush.msra.mxu0 %v29_v2  ;;  %v33_v4 = vld [vmem:[%s362_s1 + $0x18] sm:$0xff]  ;;  %v36_v6 = vld [vmem:[%s360_s2 + $0x10] sm:$0xff] }
   0x3   :  { %222 = vmatmul.msk.f32.vlgmr.msra.gmra.mxu0 %vm58_vm0, %v30_v3  ;;  %231 = vmatpush.msra.mxu2 %v29_v2  ;;  %v31_v7 = vld [vmem:[%s362_s1 + $0x8] sm:$0xff]  ;;  %v34_v8 = vld [vmem:[%s360_s2] sm:$0xff]  ;;  %v32_v10 = vld [vmem:[%s362_s1 + $0x10] sm:$0xff] }
   0x4   :  { %225 = vmatmul.msk.f32.vlgmr.msra.gmra.mxu2 %vm58_vm0, %v33_v4  ;;  %45 = vperm.xlu1 %238, %v35_v5   ;;  %v109_v9 = vld [vmem:[%s363_s4 + $0x8] sm:$0xff]  ;;  %v108_v11 = vld [vmem:[%s363_s4] sm:$0xff]  ;;  %v111_v14 = vld [vmem:[%s363_s4 + $0x18] sm:$0xff] }
   0x5   :  { %239 = vset.pattern.permute.xlu2 %v242_v0  ;;  %v209_v12 = vld [vmem:[%s364_s7] sm:$0xf]  ;;  %v110_v20 = vld [vmem:[%s363_s4 + $0x10] sm:$0xff]  ;;  %v105_v34 = vld [vmem:[%s366_s3 + $0x8] sm:$0xff] }
   0x6   :  { %129 = vperm.xlu2 %239, %v111_v14   ;;  %v179_v25 = vld [vmem:[%s365_s6] sm:$0xf]  ;;  %v106_v33 = vld [vmem:[%s366_s3 + $0x10] sm:$0xff]  ;;  %v107_v35 = vld [vmem:[%s366_s3 + $0x18] sm:$0xff] }
   0x7   :  { %v104_v32 = vld [vmem:[%s366_s3] sm:$0xff] }
   0x8   :  { %v178_v52 = vld [vmem:[%s367_s5] sm:$0xf] }
   0xa   :  { %50 = vperm.xlu0 %237, %v36_v6  }
   0xb   :  { %223 = vmatmul.msk.f32.gmra.mxu0 %vm58_vm0, %v31_v7 }
   0xc   :  { %40 = vperm.xlu1 %238, %v34_v8  }
   0xe   :  { %124 = vperm.xlu2 %239, %v110_v20  }
  0x12   :  { %119 = vperm.xlu0 %237, %v109_v9  }
  0x13   :  { %224 = vmatmul.msk.f32.gmra.mxu0 %vm58_vm0, %v32_v10 }
  0x14   :  { %114 = vperm.xlu1 %238, %v108_v11  }
  0x16   :  { %182 = vperm.xlu2 %239, %v179_v25  }
  0x1a   :  { %212 = vperm.xlu0 %237, %v209_v12  }
  0x60   :  { %v130_v36 = vpop.permute.xlu2 %129 }
  0x68   :  { %v125_v39 = vpop.permute.xlu2 %124 }
  0x70   :  { %v183_v53 = vpop.permute.xlu2 %182 }
  0x74   :  { %v56_v15 = vpop.permute.xlu0 %55 }
  0x76   :  { %v46_v16 = vpop.permute.xlu1 %45 }
  0x7c   :  { %v51_v22 = vpop.permute.xlu0 %50 }
  0x7e   :  { %v41_v23 = vpop.permute.xlu1 %40 }
  0x80   :  { %v88_v13 = vpop.f32.mrf.mxu0 }
  0x81   :  { %v89_v28 = vadd.f32 %v88_v13, %v41_v23 }
  0x83   :  { %v100_v31 = vmax.f32 %v89_v28, 0.0 }
  0x84   :  { %v120_v44 = vpop.permute.xlu0 %119 }
  0x86   :  { %v115_v47 = vpop.permute.xlu1 %114 }
  0x87   :  { %v97_v17 = vpop.f32.mrf.mxu2 }
  0x88   :  { %v91_v18 = vpop.f32.mrf.mxu0  ;;  %v98_v19 = vadd.f32 %v97_v17, %v56_v15 }
  0x89   :  { %v92_v26 = vadd.f32 %v91_v18, %v46_v16 }
  0x8a   :  { %v103_v21 = vmax.f32 %v98_v19, 0.0 }
  0x8b   :  { %v101_v30 = vmax.f32 %v92_v26, 0.0 }
  0x8c   :  { %157 = vmatpush.msra.mxu1 %v103_v21  ;;  %232 = vmatpush.msra.mxu3 %v103_v21  ;;  %v213_v57 = vpop.permute.xlu0 %212 }
  0x90   :  { %v94_v24 = vpop.f32.mrf.mxu0 }
  0x91   :  { %v95_v27 = vadd.f32 %v94_v24, %v51_v22 }
  0x93   :  { %v102_v29 = vmax.f32 %v95_v27, 0.0 }
  0x95   :  { %158 = vmatpush.msra.mxu1 %v102_v29  ;;  %233 = vmatpush.msra.mxu3 %v102_v29 }
  0x97   :  { %159 = vmatpush.msra.mxu1 %v101_v30  ;;  %234 = vmatpush.msra.mxu3 %v101_v30 }
  0x99   :  { %160 = vmatpush.msra.mxu1 %v100_v31  ;;  %235 = vmatpush.msra.mxu3 %v100_v31 }
  0x9a   :  { %226 = vmatmul.msk.f32.vlgmr.msra.gmra.mxu1 %vm132_vm1, %v104_v32  ;;  %228 = vmatmul.msk.f32.vlgmr.msra.gmra.mxu3 %vm132_vm1, %v106_v33 }
  0xa2   :  { %227 = vmatmul.msk.f32.gmra.mxu1 %vm132_vm1, %v105_v34  ;;  %229 = vmatmul.msk.f32.gmra.mxu3 %vm132_vm1, %v107_v35 }
 0x117   :  { %v162_v37 = vpop.f32.mrf.mxu1 }
 0x118   :  { %v163_v48 = vadd.f32 %v162_v37, %v115_v47 }
 0x11a   :  { %v174_v51 = vmax.f32 %v163_v48, 0.0 }
 0x11d   :  { %v168_v38 = vpop.f32.mrf.mxu3 }
 0x11e   :  { %v169_v42 = vadd.f32 %v168_v38, %v125_v39 }
 0x11f   :  { %v165_v40 = vpop.f32.mrf.mxu1 }
 0x120   :  { %v166_v45 = vadd.f32 %v165_v40, %v120_v44  ;;  %v176_v49 = vmax.f32 %v169_v42, 0.0 }
 0x122   :  { %v175_v50 = vmax.f32 %v166_v45, 0.0 }
 0x125   :  { %v171_v41 = vpop.f32.mrf.mxu3 }
 0x126   :  { %v172_v43 = vadd.f32 %v171_v41, %v130_v36 }
 0x128   :  { %v177_v46 = vmax.f32 %v172_v43, 0.0 }
 0x12a   :  { %200 = vmatpush.msrb.mxu2 %v177_v46 }
 0x12c   :  { %201 = vmatpush.msrb.mxu2 %v176_v49 }
 0x12e   :  { %202 = vmatpush.msrb.mxu2 %v175_v50 }
 0x130   :  { %203 = vmatpush.msrb.mxu2 %v174_v51 }
 0x131   :  { %230 = vmatmul.msk.f32.vlgmr.msrb.gmra.mxu2 %vm132_vm1, %v178_v52 }
 0x1b4   :  { %v205_v54 = vpop.f32.mrf.mxu2 }
 0x1b5   :  { %v206_v55 = vadd.f32 %v205_v54, %v183_v53 }
 0x1b7   :  { %240 = vtanh.f32 %v206_v55 }
 0x1bd   :  { %v241_v56 = vpop.eup %240 }
 0x1be   :  { %v215_v58 = vmul.f32 %v241_v56, %v213_v57 }
 0x1c0   :  { %217 = vst.msk [vmem:[%s368_s8] sm:$0xf] %vm216_vm2, %v215_v58 }

</bundles_post_ra>
